<compile_context>
chip_gen: v5e
topology: v5e:2x2
jax: 0.10.0
libtpu: 0.0.40
codegen_flags: <defaults>
</compile_context>

<pallas_src>
import functools

import jax
import jax.numpy as jnp
from jax.experimental import pallas as pl
from jax.experimental.pallas import tpu as pltpu


# ----------------------------- encoder kernel ------------------------------


def _encoder_kernel(xa_ref, xb_ref, w_ref, feats_ref, acc_ref, *,
                    ragged, f_total, tk):
    """feats[:, j-tile] = sum_k [xa; xb][:, k-tile] @ w[k-tile, j-tile]."""
    k = pl.program_id(1)

    @pl.when(k == 0)
    def _init():
        acc_ref[...] = jnp.zeros_like(acc_ref)

    xa = xa_ref[...]
    xb = xb_ref[...]
    if ragged:
        # Last K tile overhangs the true feature length: zero the tail columns
        # (w is zero-padded in the wrapper, so the tail contributes exactly 0
        # and no OOB garbage / NaN can leak into the accumulator).
        col = jax.lax.broadcasted_iota(jnp.int32, xa.shape, 1) + k * tk
        keep = col < f_total
        xa = jnp.where(keep, xa, 0.0)
        xb = jnp.where(keep, xb, 0.0)

    # Stack the two views in VMEM (tiny copy) and issue ONE MXU dot instead of
    # two half-filled per-view dots.
    x = jnp.concatenate([xa, xb], axis=0).astype(jnp.bfloat16)   # (2B, tk)
    acc_ref[...] += jnp.dot(x, w_ref[...].astype(jnp.bfloat16),
                            preferred_element_type=jnp.float32)

    @pl.when(k == pl.num_programs(1) - 1)
    def _done():
        feats_ref[...] = acc_ref[...].astype(feats_ref.dtype)


# ------------------------------- loss kernel -------------------------------


def _loss_kernel(fk_ref, out_ref, *, inv_t, batch, tq):
    # fk_ref  : (N, D) bf16  all features (resident keys, constant block index)
    # out_ref : (TQ, 1) f32  per-row loss contributions for this query tile
    q = pl.program_id(0)
    n = fk_ref.shape[0]

    row0 = pl.multiple_of(q * tq, tq)
    fq = fk_ref[pl.ds(row0, tq), :]          # (TQ, D) query rows, sliced in VMEM
    fk = fk_ref[...]                          # (N, D)

    # (TQ, N) similarity slab on the MXU; contract D directly (no transpose).
    s = jax.lax.dot_general(fq, fk, (((1,), (1,)), ((), ())),
                            preferred_element_type=jnp.float32) * inv_t

    row_g = jax.lax.broadcasted_iota(jnp.int32, (tq, n), 0) + q * tq
    col_g = jax.lax.broadcasted_iota(jnp.int32, (tq, n), 1)

    # positives[i] = sim[i, (i + batch) % n] -- read straight off the MXU slab
    # (exactly matches the reference's diagonal extraction of the sim matrix).
    rp = row_g + batch
    pos_col = jnp.where(rp >= n, rp - n, rp)
    pos = jnp.sum(jnp.where(col_g == pos_col, s, 0.0), axis=1, keepdims=True)

    # Exclude self-similarity (diagonal), then a stable log-sum-exp over the
    # negatives (all j != i); identical to log(sum_{j!=i} exp(sim_ij / T)).
    s_neg = jnp.where(row_g == col_g, jnp.float32(-1e30), s)
    m = jnp.max(s_neg, axis=1, keepdims=True)                    # (TQ, 1)
    denom = jnp.sum(jnp.exp(s_neg - m), axis=1, keepdims=True)   # (TQ, 1)

    out_ref[...] = m + jnp.log(denom) - pos                       # (TQ, 1)


# --------------------------------- wrapper ---------------------------------


def _vmem_budget_bytes():
    """Generation-aware VMEM budget (~75% of physical, v7x fallback)."""
    try:
        phys = int(pltpu.get_tpu_info().vmem_capacity_bytes)
    except Exception:
        phys = 64 << 20            # v7x per-TensorCore VMEM (smallest gen)
    return max((phys * 3) // 4, 16 << 20)


def _compiler_params(vmem_estimate_bytes, dim_sem, budget):
    limit = int(min(max(vmem_estimate_bytes + (4 << 20), 16 << 20), budget))
    return pltpu.CompilerParams(dimension_semantics=dim_sem,
                                vmem_limit_bytes=limit)


def _choose_tile(total, candidates):
    for c in candidates:
        if c <= total and total % c == 0:
            return c
    return total


def _enc_vmem_bytes(b, n, tk, tn):
    # 2 views x double-buffered (B, tk) f32 + double-buffered (tk, tn) f32
    # weight + double-buffered bf16 output tile + f32 accumulator scratch.
    return (2 * 2 * b * tk * 4) + (2 * tk * tn * 4) + (2 * n * tn * 2) + (n * tn * 4)


def _choose_tk(f_pad, b, n, tn, budget):
    for tk in (2048, 1024, 512, 256, 128):
        if tk <= f_pad and f_pad % tk == 0:
            if _enc_vmem_bytes(b, n, tk, tn) + (4 << 20) <= budget:
                return tk
    return 128


def _loss_vmem_bytes(n, d, tq):
    # double-buffered resident keys + query slice + ~4 (tq, n) f32 temporaries
    # (sim slab, masks, exp) + small per-row output blocks.
    return (2 * n * d * 2) + (tq * d * 2) + (4 * tq * n * 4) + (2 * tq * 128 * 4)


def _choose_tq(n, d, budget):
    # Multiples of 16 only (bf16 packed (16,128) tile); prefer >=128 to fill
    # the MXU row dimension, bounded by VMEM so the (tq, n) slab stays small.
    for tq in (512, 256, 128, 64, 32, 16):
        if tq <= n and n % tq == 0:
            if _loss_vmem_bytes(n, d, tq) + (4 << 20) <= budget:
                return tq
    return n  # tiny / awkward N: single full-extent tile


def simclr_2views_loss(view_a, view_b, w_enc, temperature=0.5):
    """view_a, view_b: (B, C, H, W); w_enc: (C*H*W, D). Returns scalar loss."""
    B = view_a.shape[0]
    n = 2 * B
    xa = view_a.reshape(B, -1)          # row-major reshape: no copy, no concat
    xb = view_b.reshape(B, -1)
    F = xa.shape[1]
    D = w_enc.shape[1]
    budget = _vmem_budget_bytes()

    # Ragged feature axis: activations stay un-padded (no extra HBM pass over
    # the big stream); only the much smaller weight is zero-padded and the
    # kernel masks the overhanging tail of the last K tile.
    ragged = (F % 128) != 0
    f_pad = ((F + 127) // 128) * 128 if ragged else F
    w = jnp.pad(w_enc, ((0, f_pad - F), (0, 0))) if ragged else w_enc

    tn = _choose_tile(D, (512, 256, 128))
    tk = _choose_tk(f_pad, B, n, tn, budget)

    # ---- encoder: feats = [xa; xb] @ w, (parallel D tiles, arbitrary K) ----
    # TODO(synk): the real `self.net` backbone is unspecified in the module; a
    # deterministic linear projection stands in for it.
    feats = pl.pallas_call(
        functools.partial(_encoder_kernel, ragged=ragged, f_total=F, tk=tk),
        out_shape=jax.ShapeDtypeStruct((n, D), jnp.bfloat16),
        grid=(D // tn, f_pad // tk),
        in_specs=[
            pl.BlockSpec((B, tk), lambda j, k: (0, k)),
            pl.BlockSpec((B, tk), lambda j, k: (0, k)),
            pl.BlockSpec((tk, tn), lambda j, k: (k, j)),
        ],
        out_specs=pl.BlockSpec((n, tn), lambda j, k: (0, j)),
        scratch_shapes=[pltpu.VMEM((n, tn), jnp.float32)],
        compiler_params=_compiler_params(_enc_vmem_bytes(B, n, tk, tn),
                                         ("parallel", "arbitrary"), budget),
    )(xa, xb, w)

    # ---- NT-Xent loss: query tiles sliced from resident keys, per-row
    # partial outputs so the query axis is 'parallel' (megacore on v7x). -----
    tq = _choose_tq(n, D, budget)
    per_row = pl.pallas_call(
        functools.partial(_loss_kernel, inv_t=float(1.0 / temperature),
                          batch=B, tq=tq),
        out_shape=jax.ShapeDtypeStruct((n, 1), jnp.float32),
        grid=(n // tq,),
        in_specs=[pl.BlockSpec((n, D), lambda q: (0, 0))],
        out_specs=pl.BlockSpec((tq, 1), lambda q: (q, 0)),
        compiler_params=_compiler_params(_loss_vmem_bytes(n, D, tq),
                                         ("parallel",), budget),
    )(feats)

    return jnp.sum(per_row) / n


# ------------------------------- reference ---------------------------------


def _reference_loss(view_a, view_b, w_enc, temperature=0.5):
    """Pure-JAX transcription of the PyTorch module (same bf16 encoder path)."""
    x = jnp.concatenate([view_a, view_b], axis=0)
    n = x.shape[0]
    bs = n // 2
    feats = jnp.dot(x.reshape(n, -1).astype(jnp.bfloat16),
                    w_enc.astype(jnp.bfloat16),
                    preferred_element_type=jnp.float32).astype(jnp.bfloat16)
    sim = jnp.dot(feats, feats.T, preferred_element_type=jnp.float32)
    sim_ij = jnp.diagonal(sim, offset=bs)
    sim_ji = jnp.diagonal(sim, offset=-bs)
    positives = jnp.concatenate([sim_ij, sim_ji], axis=0)
    neg_mask = 1.0 - jnp.eye(n, dtype=jnp.float32)
    nominator = jnp.exp(positives / temperature)
    denominator = jnp.sum(neg_mask * jnp.exp(sim / temperature), axis=1)
    loss_partial = -jnp.log(nominator / denominator)
    return jnp.sum(loss_partial) / n


if __name__ == "__main__":
    key = jax.random.PRNGKey(0)
    B, C, H, W = 8, 4, 16, 16          # per-view batch; N = 2B = 16, F = 1024
    D = 128                            # lane/MXU-aligned feature dim
    temperature = 0.5

    k1, k2, k3 = jax.random.split(key, 3)
    view_a = jax.random.normal(k1, (B, C, H, W), dtype=jnp.float32)
    view_b = jax.random.normal(k2, (B, C, H, W), dtype=jnp.float32)
    # deterministic encoder weight (stand-in for self.net); small scale keeps
    # exp(sim/T) finite in the un-normalized reference formulation.
    w_enc = jax.random.normal(k3, (C * H * W, D), dtype=jnp.float32) * 0.01

    loss = simclr_2views_loss(view_a, view_b, w_enc, temperature)
    jax.block_until_ready(loss)

    ref = _reference_loss(view_a, view_b, w_enc, temperature)
    assert jnp.allclose(loss, ref, rtol=2e-3, atol=2e-3), (loss, ref)

    print("KERNEL_OK")
</pallas_src>

<mosaic_0001>
module attributes {stable_mosaic.version = 11 : i64} {
  func.func @_encoder_kernel(%arg0: i32, %arg1: i32, %arg2: memref<8x1024xf32, #tpu.memory_space<vmem>>, %arg3: memref<8x1024xf32, #tpu.memory_space<vmem>>, %arg4: memref<1024x128xf32, #tpu.memory_space<vmem>>, %arg5: memref<16x128xbf16, #tpu.memory_space<vmem>>, %arg6: memref<16x128xf32, #tpu.memory_space<vmem>>) attributes {dimension_semantics = [#tpu.dimension_semantics<parallel>, #tpu.dimension_semantics<arbitrary>], iteration_bounds = array<i64: 1, 1>, scalar_prefetch = 0 : i64, scratch_operands = 1 : i64, tpu.core_type = #tpu.core_type<tc>, window_params = [{transform_indices = @transform_0, window_bounds = array<i64: 8, 1024>}, {transform_indices = @transform_1, window_bounds = array<i64: 8, 1024>}, {transform_indices = @transform_2, window_bounds = array<i64: 1024, 128>}, {transform_indices = @transform_3, window_bounds = array<i64: 16, 128>}]} {
    %c0_i32 = arith.constant 0 : i32
    %0 = arith.cmpi eq, %arg1, %c0_i32 : i32
    %1 = arith.extui %0 : i1 to i32
    %c0_i32_0 = arith.constant 0 : i32
    %2 = arith.cmpi ne, %1, %c0_i32_0 : i32
    scf.if %2 {
      %cst_12 = arith.constant 0.000000e+00 : f32
      %16 = vector.broadcast %cst_12 : f32 to vector<16x128xf32>
      %c0_13 = arith.constant 0 : index
      %c0_14 = arith.constant 0 : index
      %17 = vector.load %arg6[%c0_13, %c0_14] : memref<16x128xf32, #tpu.memory_space<vmem>>, vector<16x128xf32>
      tpu.vector_store %arg6[%c0_13, %c0_14], %16 {strides = array<i32>} : memref<16x128xf32, #tpu.memory_space<vmem>>, vector<16x128xf32>,
    } else {
    }
    %c0 = arith.constant 0 : index
    %c0_1 = arith.constant 0 : index
    %3 = vector.load %arg2[%c0, %c0_1] : memref<8x1024xf32, #tpu.memory_space<vmem>>, vector<8x1024xf32>
    %c0_2 = arith.constant 0 : index
    %c0_3 = arith.constant 0 : index
    %4 = vector.load %arg3[%c0_2, %c0_3] : memref<8x1024xf32, #tpu.memory_space<vmem>>, vector<8x1024xf32>
    %5 = tpu.concatenate %3, %4 in 0 : vector<8x1024xf32>, vector<8x1024xf32> -> vector<16x1024xf32>
    %6 = arith.truncf %5 : vector<16x1024xf32> to vector<16x1024xbf16>
    %c0_4 = arith.constant 0 : index
    %c0_5 = arith.constant 0 : index
    %7 = vector.load %arg6[%c0_4, %c0_5] : memref<16x128xf32, #tpu.memory_space<vmem>>, vector<16x128xf32>
    %c0_6 = arith.constant 0 : index
    %c0_7 = arith.constant 0 : index
    %8 = vector.load %arg4[%c0_6, %c0_7] : memref<1024x128xf32, #tpu.memory_space<vmem>>, vector<1024x128xf32>
    %9 = arith.truncf %8 : vector<1024x128xf32> to vector<1024x128xbf16>
    %cst = arith.constant dense<0.000000e+00> : vector<16x128xf32>
    %10 = tpu.matmul %6, %9, %cst {dimension_numbers = #tpu.dot_dimension_numbers<[1], [0], [0], [1], [0, 0, 1, 1], [], []>} : vector<16x1024xbf16>, vector<1024x128xbf16>, vector<16x128xf32> -> vector<16x128xf32>
    %11 = arith.addf %7, %10 : vector<16x128xf32>
    %c0_8 = arith.constant 0 : index
    %c0_9 = arith.constant 0 : index
    %12 = vector.load %arg6[%c0_8, %c0_9] : memref<16x128xf32, #tpu.memory_space<vmem>>, vector<16x128xf32>
    tpu.vector_store %arg6[%c0_8, %c0_9], %11 {strides = array<i32>} : memref<16x128xf32, #tpu.memory_space<vmem>>, vector<16x128xf32>,
    %c0_i32_10 = arith.constant 0 : i32
    %13 = arith.cmpi eq, %arg1, %c0_i32_10 : i32
    %14 = arith.extui %13 : i1 to i32
    %c0_i32_11 = arith.constant 0 : i32
    %15 = arith.cmpi ne, %14, %c0_i32_11 : i32
    scf.if %15 {
      %c0_12 = arith.constant 0 : index
      %c0_13 = arith.constant 0 : index
      %16 = vector.load %arg6[%c0_12, %c0_13] : memref<16x128xf32, #tpu.memory_space<vmem>>, vector<16x128xf32>
      %17 = arith.truncf %16 : vector<16x128xf32> to vector<16x128xbf16>
      %c0_14 = arith.constant 0 : index
      %c0_15 = arith.constant 0 : index
      %18 = vector.load %arg5[%c0_14, %c0_15] : memref<16x128xbf16, #tpu.memory_space<vmem>>, vector<16x128xbf16>
      tpu.vector_store %arg5[%c0_14, %c0_15], %17 {strides = array<i32>} : memref<16x128xbf16, #tpu.memory_space<vmem>>, vector<16x128xbf16>,
    } else {
    }
    return
  }
  func.func @transform_0(%arg0: i32, %arg1: i32) -> (i32, i32) {
    %c0_i32 = arith.constant 0 : i32
    %c0_i32_0 = arith.constant 0 : i32
    return %c0_i32, %arg1 : i32, i32
  }
  func.func @transform_1(%arg0: i32, %arg1: i32) -> (i32, i32) {
    %c0_i32 = arith.constant 0 : i32
    %c0_i32_0 = arith.constant 0 : i32
    return %c0_i32, %arg1 : i32, i32
  }
  func.func @transform_2(%arg0: i32, %arg1: i32) -> (i32, i32) {
    %c0_i32 = arith.constant 0 : i32
    return %arg1, %arg0 : i32, i32
  }
  func.func @transform_3(%arg0: i32, %arg1: i32) -> (i32, i32) {
    %c0_i32 = arith.constant 0 : i32
    %c0_i32_0 = arith.constant 0 : i32
    return %c0_i32, %arg0 : i32, i32
  }
}

</mosaic_0001>

<bundles_post_ra>
// kernel: tpu_custom_call.1
= control target key start
LH: loop header
LB: loop body
LE: loop exit
PB: predicated region body
PF: predicated region fallthrough
CT: control target
= control target key end

     0   :  { %8 = vsyncpa [#allocation4], 0  ;;  %s582_s0 = inlined_call_operand.hbm [shape: f32[8,1024], index: 0, kind: input, shape index: {}]   ;;  %s583_s1 = inlined_call_operand.hbm [shape: f32[8,1024], index: 1, kind: input, shape index: {}]   ;;  %s584_s2 = inlined_call_operand.hbm [shape: f32[1024,128], index: 2, kind: input, shape index: {}]   ;;  %s585_s3 = inlined_call_operand.hbm [shape: bf16[16,128], index: 3, kind: output, shape index: {}]  }
   0x1   :  { %9 = vsyncpa [#allocation7], 0  ;;  %s27_s14 = sshll.u32 %s583_s1, 4  ;;  %s28_s14 = int_to_ptr.hbm [resolvable:$true] %s27_s14 }
   0x2   :  { %10 = vsyncpa [#allocation5], 0  ;;  %s542_s15 = smov [#allocation6]   ;;  %s16_s19 = sshll.u32 %s582_s0, 4  ;;  %s17_s19 = int_to_ptr.hbm [resolvable:$true] %s16_s19 }
   0x3   :  { %s29_s16 = sshll.u32 %s542_s15, 4  ;;  %s543_s20 = smov [#allocation3]   ;;  %s30_s16 = int_to_ptr.vmem [resolvable:$true] %s29_s16 }
   0x4   :  { %32 = dma.hbm_to_vmem [thread:$0]  %s28_s14, 1024, %s30_s16, [#allocation7]  }
   0x5   :  { %s18_s21 = sshll.u32 %s543_s20, 4  ;;  %s37_s24 = sshll.u32 %s584_s2, 4  ;;  %s19_s21 = int_to_ptr.vmem [resolvable:$true] %s18_s21  ;;  %s38_s24 = int_to_ptr.hbm [resolvable:$true] %s37_s24 }
   0x6   :  { %21 = dma.hbm_to_vmem [thread:$0]  %s17_s19, 1024, %s19_s21, [#allocation4]  }
   0x7   :  { %s544_s1 = smov [#allocation8]   ;;  %s545_s26 = smov 128  }
   0x8   :  { %s39_s25 = sshll.u32 %s544_s1, 4  ;;  %s546_s27 = smov 8   ;;  %s40_s25 = int_to_ptr.vmem [resolvable:$true] %s39_s25 }
   0x9   :  { %45 = dma.hbm_to_vmem [thread:$0]  %s38_s24, 16384, %s40_s25, [#allocation7], %s545_s26, %s545_s26, %s546_s27  }
   0xa   :  { %536 = dma.done.wait [#allocation4], 1024  }
   0xb   :  { %537 = vsyncadd [#allocation4], 4294966272 }
   0xc   :  { %538 = dma.done.wait [#allocation7], 17408  }
   0xd   :  { %539 = vsyncadd [#allocation7], 4294949888  ;;  %v104_v0 = vld [vmem:[#allocation8 + $0x70] sm:$0xff]  ;;  %v105_v1 = vld [vmem:[#allocation8 + $0x78] sm:$0xff]  ;;  %s547_s0 = smov [#allocation9]   ;;  %s413_s30 = sshll.u32 %s585_s3, 4  ;;  %s414_s30 = int_to_ptr.hbm [resolvable:$true] %s413_s30 }
   0xe   :  { %v120_v2 = vld [vmem:[#allocation8 + $0xf0] sm:$0xff]  ;;  %v225_v3 = vpack.c.bf16 %v105_v1, %v104_v0  ;;  %v121_v4 = vld [vmem:[#allocation8 + $0xf8] sm:$0xff]  ;;  %v102_v11 = vld [vmem:[#allocation8 + $0x60] sm:$0xff]  ;;  %s411_s2 = sshll.u32 %s547_s0, 4  ;;  %s548_s4 = smov 64   ;;  %s412_s2 = int_to_ptr.vmem [resolvable:$true] %s411_s2 }
   0xf   :  { %v136_v5 = vld [vmem:[#allocation8 + $0x170] sm:$0xff]  ;;  %v137_v6 = vld [vmem:[#allocation8 + $0x178] sm:$0xff]  ;;  %v233_v7 = vpack.c.bf16 %v121_v4, %v120_v2  ;;  %v103_v13 = vld [vmem:[#allocation8 + $0x68] sm:$0xff]  ;;  %s549_s5 = smov 4  }
  0x10   :  { %v241_v8 = vpack.c.bf16 %v137_v6, %v136_v5  ;;  %v152_v9 = vld [vmem:[#allocation8 + $0x1f0] sm:$0xff]  ;;  %v153_v10 = vld [vmem:[#allocation8 + $0x1f8] sm:$0xff]  ;;  %282 = vmatpush.bf16.msra.mxu0 %v225_v3  ;;  %v118_v14 = vld [vmem:[#allocation8 + $0xe0] sm:$0xff]  ;;  %v224_v16 = vpack.c.bf16 %v103_v13, %v102_v11 }
  0x11   :  { %v249_v12 = vpack.c.bf16 %v153_v10, %v152_v9  ;;  %v119_v15 = vld [vmem:[#allocation8 + $0xe8] sm:$0xff]  ;;  %296 = vmatpush.bf16.msra.mxu1 %v233_v7  ;;  %v134_v18 = vld [vmem:[#allocation8 + $0x160] sm:$0xff]  ;;  %v100_v23 = vld [vmem:[#allocation8 + $0x50] sm:$0xff] }
  0x12   :  { %310 = vmatpush.bf16.msra.mxu2 %v241_v8  ;;  %v232_v17 = vpack.c.bf16 %v119_v15, %v118_v14  ;;  %v135_v19 = vld [vmem:[#allocation8 + $0x168] sm:$0xff]  ;;  %v150_v20 = vld [vmem:[#allocation8 + $0x1e0] sm:$0xff]  ;;  %v101_v24 = vld [vmem:[#allocation8 + $0x58] sm:$0xff] }
  0x13   :  { %324 = vmatpush.bf16.msra.mxu3 %v249_v12  ;;  %v240_v21 = vpack.c.bf16 %v135_v19, %v134_v18  ;;  %v151_v22 = vld [vmem:[#allocation8 + $0x1e8] sm:$0xff]  ;;  %v116_v26 = vld [vmem:[#allocation8 + $0xd0] sm:$0xff]  ;;  %v117_v27 = vld [vmem:[#allocation8 + $0xd8] sm:$0xff]  ;;  %v223_v29 = vpack.c.bf16 %v101_v24, %v100_v23 }
  0x14   :  { %v248_v25 = vpack.c.bf16 %v151_v22, %v150_v20  ;;  %v132_v28 = vld [vmem:[#allocation8 + $0x150] sm:$0xff]  ;;  %283 = vmatpush.bf16.msra.mxu0 %v224_v16  ;;  %v133_v30 = vld [vmem:[#allocation8 + $0x158] sm:$0xff]  ;;  %v231_v33 = vpack.c.bf16 %v117_v27, %v116_v26  ;;  %v98_v35 = vld [vmem:[#allocation8 + $0x40] sm:$0xff] }
  0x15   :  { %v148_v31 = vld [vmem:[#allocation8 + $0x1d0] sm:$0xff]  ;;  %v149_v32 = vld [vmem:[#allocation8 + $0x1d8] sm:$0xff]  ;;  %297 = vmatpush.bf16.msra.mxu1 %v232_v17  ;;  %v239_v34 = vpack.c.bf16 %v133_v30, %v132_v28  ;;  %v99_v36 = vld [vmem:[#allocation8 + $0x48] sm:$0xff] }
  0x16   :  { %311 = vmatpush.bf16.msra.mxu2 %v240_v21  ;;  %v114_v37 = vld [vmem:[#allocation8 + $0xc0] sm:$0xff]  ;;  %v247_v38 = vpack.c.bf16 %v149_v32, %v148_v31  ;;  %v115_v39 = vld [vmem:[#allocation8 + $0xc8] sm:$0xff]  ;;  %v222_v44 = vpack.c.bf16 %v99_v36, %v98_v35  ;;  %v96_v47 = vld [vmem:[#allocation8 + $0x30] sm:$0xff] }
  0x17   :  { %325 = vmatpush.bf16.msra.mxu3 %v248_v25  ;;  %v130_v40 = vld [vmem:[#allocation8 + $0x140] sm:$0xff]  ;;  %v131_v41 = vld [vmem:[#allocation8 + $0x148] sm:$0xff]  ;;  %v230_v45 = vpack.c.bf16 %v115_v39, %v114_v37  ;;  %v97_v48 = vld [vmem:[#allocation8 + $0x38] sm:$0xff] }
  0x18   :  { %v146_v42 = vld [vmem:[#allocation8 + $0x1c0] sm:$0xff]  ;;  %v147_v43 = vld [vmem:[#allocation8 + $0x1c8] sm:$0xff]  ;;  %284 = vmatpush.bf16.msra.mxu0 %v223_v29  ;;  %v238_v46 = vpack.c.bf16 %v131_v41, %v130_v40  ;;  %v112_v49 = vld [vmem:[#allocation8 + $0xb0] sm:$0xff]  ;;  %v221_v56 = vpack.c.bf16 %v97_v48, %v96_v47 }
  0x19   :  { %298 = vmatpush.bf16.msra.mxu1 %v231_v33  ;;  %v246_v50 = vpack.c.bf16 %v147_v43, %v146_v42  ;;  %v113_v51 = vld [vmem:[#allocation8 + $0xb8] sm:$0xff]  ;;  %v128_v52 = vld [vmem:[#allocation8 + $0x130] sm:$0xff]  ;;  %v94_v59 = vld [vmem:[#allocation8 + $0x20] sm:$0xff] }
  0x1a   :  { %312 = vmatpush.bf16.msra.mxu2 %v239_v34  ;;  %v129_v53 = vld [vmem:[#allocation8 + $0x138] sm:$0xff]  ;;  %v144_v54 = vld [vmem:[#allocation8 + $0x1b0] sm:$0xff]  ;;  %v229_v57 = vpack.c.bf16 %v113_v51, %v112_v49  ;;  %v95_v60 = vld [vmem:[#allocation8 + $0x28] sm:$0xff] }
  0x1b   :  { %326 = vmatpush.bf16.msra.mxu3 %v247_v38  ;;  %v145_v55 = vld [vmem:[#allocation8 + $0x1b8] sm:$0xff]  ;;  %v237_v58 = vpack.c.bf16 %v129_v53, %v128_v52  ;;  %v110_v61 = vld [vmem:[#allocation8 + $0xa0] sm:$0xff]  ;;  %v111_v63 = vld [vmem:[#allocation8 + $0xa8] sm:$0xff]  ;;  %v220_v4 = vpack.c.bf16 %v95_v60, %v94_v59 }
  0x1c   :  { %285 = vmatpush.bf16.msra.mxu0 %v222_v44  ;;  %v245_v62 = vpack.c.bf16 %v145_v55, %v144_v54  ;;  %v126_v0 = vld [vmem:[#allocation8 + $0x120] sm:$0xff]  ;;  %v127_v1 = vld [vmem:[#allocation8 + $0x128] sm:$0xff]  ;;  %v228_v5 = vpack.c.bf16 %v111_v63, %v110_v61  ;;  %v92_v7 = vld [vmem:[#allocation8 + $0x10] sm:$0xff] }
  0x1d   :  { %299 = vmatpush.bf16.msra.mxu1 %v230_v45  ;;  %v142_v2 = vld [vmem:[#allocation8 + $0x1a0] sm:$0xff]  ;;  %v143_v3 = vld [vmem:[#allocation8 + $0x1a8] sm:$0xff]  ;;  %v236_v6 = vpack.c.bf16 %v127_v1, %v126_v0  ;;  %v93_v8 = vld [vmem:[#allocation8 + $0x18] sm:$0xff] }
  0x1e   :  { %313 = vmatpush.bf16.msra.mxu2 %v238_v46  ;;  %v108_v9 = vld [vmem:[#allocation8 + $0x90] sm:$0xff]  ;;  %v244_v10 = vpack.c.bf16 %v143_v3, %v142_v2  ;;  %v109_v11 = vld [vmem:[#allocation8 + $0x98] sm:$0xff]  ;;  %v90_v16 = vld [vmem:[#allocation8] sm:$0xff]  ;;  %v219_v17 = vpack.c.bf16 %v93_v8, %v92_v7 }
  0x1f   :  { %327 = vmatpush.bf16.msra.mxu3 %v246_v50  ;;  %v124_v12 = vld [vmem:[#allocation8 + $0x110] sm:$0xff]  ;;  %v125_v13 = vld [vmem:[#allocation8 + $0x118] sm:$0xff]  ;;  %v91_v18 = vld [vmem:[#allocation8 + $0x8] sm:$0xff]  ;;  %v227_v21 = vpack.c.bf16 %v109_v11, %v108_v9 }
  0x20   :  { %286 = vmatpush.bf16.msra.mxu0 %v221_v56  ;;  %v140_v14 = vld [vmem:[#allocation8 + $0x190] sm:$0xff]  ;;  %v141_v15 = vld [vmem:[#allocation8 + $0x198] sm:$0xff]  ;;  %v106_v19 = vld [vmem:[#allocation8 + $0x80] sm:$0xff]  ;;  %v235_v22 = vpack.c.bf16 %v125_v13, %v124_v12  ;;  %v218_v33 = vpack.c.bf16 %v91_v18, %v90_v16 }
  0x21   :  { %300 = vmatpush.bf16.msra.mxu1 %v229_v57  ;;  %v107_v20 = vld [vmem:[#allocation8 + $0x88] sm:$0xff]  ;;  %v122_v23 = vld [vmem:[#allocation8 + $0x100] sm:$0xff]  ;;  %v243_v26 = vpack.c.bf16 %v141_v15, %v140_v14  ;;  %v168_v28 = vld [vmem:[#allocation8 + $0x270] sm:$0xff] }
  0x22   :  { %314 = vmatpush.bf16.msra.mxu2 %v237_v58  ;;  %v123_v24 = vld [vmem:[#allocation8 + $0x108] sm:$0xff]  ;;  %v138_v25 = vld [vmem:[#allocation8 + $0x180] sm:$0xff]  ;;  %v169_v29 = vld [vmem:[#allocation8 + $0x278] sm:$0xff]  ;;  %v226_v37 = vpack.c.bf16 %v107_v20, %v106_v19 }
  0x23   :  { %328 = vmatpush.bf16.msra.mxu3 %v245_v62  ;;  %v139_v27 = vld [vmem:[#allocation8 + $0x188] sm:$0xff]  ;;  %v184_v30 = vld [vmem:[#allocation8 + $0x2f0] sm:$0xff]  ;;  %v185_v31 = vld [vmem:[#allocation8 + $0x2f8] sm:$0xff]  ;;  %v234_v38 = vpack.c.bf16 %v123_v24, %v122_v23  ;;  %v257_v44 = vpack.c.bf16 %v169_v29, %v168_v28 }
  0x24   :  { %287 = vmatpush.bf16.msra.mxu0 %v220_v4  ;;  %v200_v32 = vld [vmem:[#allocation8 + $0x370] sm:$0xff]  ;;  %v201_v34 = vld [vmem:[#allocation8 + $0x378] sm:$0xff]  ;;  %v166_v39 = vld [vmem:[#allocation8 + $0x260] sm:$0xff]  ;;  %v242_v43 = vpack.c.bf16 %v139_v27, %v138_v25  ;;  %v265_v49 = vpack.c.bf16 %v185_v31, %v184_v30 }
  0x25   :  { %301 = vmatpush.bf16.msra.mxu1 %v228_v5  ;;  %v216_v35 = vld [vmem:[#allocation8 + $0x3f0] sm:$0xff]  ;;  %v217_v36 = vld [vmem:[#allocation8 + $0x3f8] sm:$0xff]  ;;  %v167_v40 = vld [vmem:[#allocation8 + $0x268] sm:$0xff]  ;;  %v273_v50 = vpack.c.bf16 %v201_v34, %v200_v32 }
  0x26   :  { %315 = vmatpush.bf16.msra.mxu2 %v236_v6  ;;  %v66_v41 = vld [vmem:[#allocation3 + $0x10] sm:$0xff]  ;;  %v182_v45 = vld [vmem:[#allocation8 + $0x2e0] sm:$0xff]  ;;  %v183_v46 = vld [vmem:[#allocation8 + $0x2e8] sm:$0xff]  ;;  %v281_v54 = vpack.c.bf16 %v217_v36, %v216_v35  ;;  %v256_v63 = vpack.c.bf16 %v167_v40, %v166_v39 }
  0x27   :  { %329 = vmatpush.bf16.msra.mxu3 %v244_v10  ;;  %v74_v42 = vld [vmem:[#allocation6 + $0x10] sm:$0xff]  ;;  %v67_v47 = vld [vmem:[#allocation3 + $0x18] sm:$0xff]  ;;  %v198_v51 = vld [vmem:[#allocation8 + $0x360] sm:$0xff]  ;;  %v264_v1 = vpack.c.bf16 %v183_v46, %v182_v45 }
  0x28   :  { %288 = vmatpush.bf16.msra.mxu0 %v219_v17  ;;  %v75_v48 = vld [vmem:[#allocation6 + $0x18] sm:$0xff]  ;;  %v199_v52 = vld [vmem:[#allocation8 + $0x368] sm:$0xff]  ;;  %v64_v53 = vld [vmem:[#allocation3] sm:$0xff]  ;;  %v82_v55 = vpack.c.bf16 %v74_v42, %v66_v41 }
  0x29   :  { %302 = vmatpush.bf16.msra.mxu1 %v227_v21  ;;  %v72_v56 = vld [vmem:[#allocation6] sm:$0xff]  ;;  %v65_v57 = vld [vmem:[#allocation3 + $0x8] sm:$0xff]  ;;  %v83_v61 = vpack.c.bf16 %v75_v48, %v67_v47  ;;  %v272_v2 = vpack.c.bf16 %v199_v52, %v198_v51  ;;  %v164_v3 = vld [vmem:[#allocation8 + $0x250] sm:$0xff] }
  0x2a   :  { %316 = vmatpush.bf16.msra.mxu2 %v235_v22  ;;  %v73_v58 = vld [vmem:[#allocation6 + $0x8] sm:$0xff]  ;;  %v214_v59 = vld [vmem:[#allocation8 + $0x3e0] sm:$0xff]  ;;  %v80_v62 = vpack.c.bf16 %v72_v56, %v64_v53  ;;  %v165_v4 = vld [vmem:[#allocation8 + $0x258] sm:$0xff] }
  0x2b   :  { %330 = vmatpush.bf16.msra.mxu3 %v243_v26  ;;  %v215_v60 = vld [vmem:[#allocation8 + $0x3e8] sm:$0xff]  ;;  %v81_v0 = vpack.c.bf16 %v73_v58, %v65_v57  ;;  %v180_v5 = vld [vmem:[#allocation8 + $0x2d0] sm:$0xff]  ;;  %v181_v7 = vld [vmem:[#allocation8 + $0x2d8] sm:$0xff]  ;;  %v255_v12 = vpack.c.bf16 %v165_v4, %v164_v3 }
  0x2c   :  { %289 = vmatpush.bf16.msra.mxu0 %v218_v33  ;;  %v280_v6 = vpack.c.bf16 %v215_v60, %v214_v59  ;;  %v196_v8 = vld [vmem:[#allocation8 + $0x350] sm:$0xff]  ;;  %v197_v9 = vld [vmem:[#allocation8 + $0x358] sm:$0xff]  ;;  %v263_v13 = vpack.c.bf16 %v181_v7, %v180_v5  ;;  %v162_v15 = vld [vmem:[#allocation8 + $0x240] sm:$0xff] }
  0x2d   :  { %303 = vmatpush.bf16.msra.mxu1 %v226_v37  ;;  %v212_v10 = vld [vmem:[#allocation8 + $0x3d0] sm:$0xff]  ;;  %v213_v11 = vld [vmem:[#allocation8 + $0x3d8] sm:$0xff]  ;;  %v271_v14 = vpack.c.bf16 %v197_v9, %v196_v8  ;;  %v163_v16 = vld [vmem:[#allocation8 + $0x248] sm:$0xff] }
  0x2e   :  { %317 = vmatpush.bf16.msra.mxu2 %v234_v38  ;;  %v178_v17 = vld [vmem:[#allocation8 + $0x2c0] sm:$0xff]  ;;  %v279_v18 = vpack.c.bf16 %v213_v11, %v212_v10  ;;  %v179_v19 = vld [vmem:[#allocation8 + $0x2c8] sm:$0xff]  ;;  %v254_v24 = vpack.c.bf16 %v163_v16, %v162_v15  ;;  %v160_v27 = vld [vmem:[#allocation8 + $0x230] sm:$0xff] }
  0x2f   :  { %331 = vmatpush.bf16.msra.mxu3 %v242_v43  ;;  %290 = vmatmul.bf16.vlgmr.msra.gmra.mxu0 %v80_v62  ;;  %v194_v20 = vld [vmem:[#allocation8 + $0x340] sm:$0xff]  ;;  %v195_v21 = vld [vmem:[#allocation8 + $0x348] sm:$0xff]  ;;  %v262_v25 = vpack.c.bf16 %v179_v19, %v178_v17  ;;  %v161_v28 = vld [vmem:[#allocation8 + $0x238] sm:$0xff] }
  0x30   :  { %338 = vmatpush.bf16.msrb.mxu0 %v257_v44  ;;  %304 = vmatmul.bf16.vlgmr.msra.gmra.mxu1 %v81_v0  ;;  %v210_v22 = vld [vmem:[#allocation8 + $0x3c0] sm:$0xff]  ;;  %v211_v23 = vld [vmem:[#allocation8 + $0x3c8] sm:$0xff]  ;;  %v270_v26 = vpack.c.bf16 %v195_v21, %v194_v20  ;;  %v176_v29 = vld [vmem:[#allocation8 + $0x2b0] sm:$0xff]  ;;  %v253_v36 = vpack.c.bf16 %v161_v28, %v160_v27 }
  0x31   :  { %352 = vmatpush.bf16.msrb.mxu1 %v265_v49  ;;  %318 = vmatmul.bf16.vlgmr.msra.gmra.mxu2 %v82_v55  ;;  %v278_v30 = vpack.c.bf16 %v211_v23, %v210_v22  ;;  %v177_v31 = vld [vmem:[#allocation8 + $0x2b8] sm:$0xff]  ;;  %v192_v32 = vld [vmem:[#allocation8 + $0x330] sm:$0xff]  ;;  %v158_v39 = vld [vmem:[#allocation8 + $0x220] sm:$0xff] }
  0x32   :  { %366 = vmatpush.bf16.msrb.mxu2 %v273_v50  ;;  %332 = vmatmul.bf16.vlgmr.msra.gmra.mxu3 %v83_v61  ;;  %v193_v33 = vld [vmem:[#allocation8 + $0x338] sm:$0xff]  ;;  %v208_v34 = vld [vmem:[#allocation8 + $0x3b0] sm:$0xff]  ;;  %v261_v37 = vpack.c.bf16 %v177_v31, %v176_v29  ;;  %v159_v40 = vld [vmem:[#allocation8 + $0x228] sm:$0xff] }
  0x33   :  { %380 = vmatpush.bf16.msrb.mxu3 %v281_v54  ;;  %v209_v35 = vld [vmem:[#allocation8 + $0x3b8] sm:$0xff]  ;;  %v269_v38 = vpack.c.bf16 %v193_v33, %v192_v32  ;;  %v174_v41 = vld [vmem:[#allocation8 + $0x2a0] sm:$0xff]  ;;  %v175_v43 = vld [vmem:[#allocation8 + $0x2a8] sm:$0xff]  ;;  %v252_v48 = vpack.c.bf16 %v159_v40, %v158_v39 }
  0x34   :  { %339 = vmatpush.bf16.msrb.mxu0 %v256_v63  ;;  %v277_v42 = vpack.c.bf16 %v209_v35, %v208_v34  ;;  %v190_v44 = vld [vmem:[#allocation8 + $0x320] sm:$0xff]  ;;  %v191_v45 = vld [vmem:[#allocation8 + $0x328] sm:$0xff]  ;;  %v260_v49 = vpack.c.bf16 %v175_v43, %v174_v41  ;;  %v156_v51 = vld [vmem:[#allocation8 + $0x210] sm:$0xff] }
  0x35   :  { %353 = vmatpush.bf16.msrb.mxu1 %v264_v1  ;;  %v206_v46 = vld [vmem:[#allocation8 + $0x3a0] sm:$0xff]  ;;  %v207_v47 = vld [vmem:[#allocation8 + $0x3a8] sm:$0xff]  ;;  %v268_v50 = vpack.c.bf16 %v191_v45, %v190_v44  ;;  %v157_v52 = vld [vmem:[#allocation8 + $0x218] sm:$0xff] }
  0x36   :  { %367 = vmatpush.bf16.msrb.mxu2 %v272_v2  ;;  %v172_v53 = vld [vmem:[#allocation8 + $0x290] sm:$0xff]  ;;  %v276_v54 = vpack.c.bf16 %v207_v47, %v206_v46  ;;  %v173_v55 = vld [vmem:[#allocation8 + $0x298] sm:$0xff]  ;;  %v251_v60 = vpack.c.bf16 %v157_v52, %v156_v51  ;;  %v154_v63 = vld [vmem:[#allocation8 + $0x200] sm:$0xff] }
  0x37   :  { %381 = vmatpush.bf16.msrb.mxu3 %v280_v6  ;;  %v188_v56 = vld [vmem:[#allocation8 + $0x310] sm:$0xff]  ;;  %v189_v57 = vld [vmem:[#allocation8 + $0x318] sm:$0xff]  ;;  %v259_v61 = vpack.c.bf16 %v173_v55, %v172_v53  ;;  %v155_v0 = vld [vmem:[#allocation8 + $0x208] sm:$0xff] }
  0x38   :  { %340 = vmatpush.bf16.msrb.mxu0 %v255_v12  ;;  %v204_v58 = vld [vmem:[#allocation8 + $0x390] sm:$0xff]  ;;  %v205_v59 = vld [vmem:[#allocation8 + $0x398] sm:$0xff]  ;;  %v267_v62 = vpack.c.bf16 %v189_v57, %v188_v56  ;;  %v170_v1 = vld [vmem:[#allocation8 + $0x280] sm:$0xff]  ;;  %v250_v8 = vpack.c.bf16 %v155_v0, %v154_v63 }
  0x39   :  { %354 = vmatpush.bf16.msrb.mxu1 %v263_v13  ;;  %v275_v2 = vpack.c.bf16 %v205_v59, %v204_v58  ;;  %v171_v3 = vld [vmem:[#allocation8 + $0x288] sm:$0xff]  ;;  %v186_v4 = vld [vmem:[#allocation8 + $0x300] sm:$0xff]  ;;  %v70_v15 = vld [vmem:[#allocation3 + $0x30] sm:$0xff] }
  0x3a   :  { %368 = vmatpush.bf16.msrb.mxu2 %v271_v14  ;;  %v187_v5 = vld [vmem:[#allocation8 + $0x308] sm:$0xff]  ;;  %v202_v6 = vld [vmem:[#allocation8 + $0x380] sm:$0xff]  ;;  %v258_v12 = vpack.c.bf16 %v171_v3, %v170_v1  ;;  %v78_v16 = vld [vmem:[#allocation6 + $0x30] sm:$0xff] }
  0x3b   :  { %382 = vmatpush.bf16.msrb.mxu3 %v279_v18  ;;  %v203_v7 = vld [vmem:[#allocation8 + $0x388] sm:$0xff]  ;;  %v68_v9 = vld [vmem:[#allocation3 + $0x20] sm:$0xff]  ;;  %v266_v13 = vpack.c.bf16 %v187_v5, %v186_v4  ;;  %v71_v18 = vld [vmem:[#allocation3 + $0x38] sm:$0xff]  ;;  %v86_v22 = vpack.c.bf16 %v78_v16, %v70_v15 }
  0x3c   :  { %341 = vmatpush.bf16.msrb.mxu0 %v254_v24  ;;  %v76_v10 = vld [vmem:[#allocation6 + $0x20] sm:$0xff]  ;;  %v69_v11 = vld [vmem:[#allocation3 + $0x28] sm:$0xff]  ;;  %v274_v17 = vpack.c.bf16 %v203_v7, %v202_v6  ;;  %v79_v19 = vld [vmem:[#allocation6 + $0x38] sm:$0xff] }
  0x3d   :  { %355 = vmatpush.bf16.msrb.mxu1 %v262_v25  ;;  %v77_v14 = vld [vmem:[#allocation6 + $0x28] sm:$0xff]  ;;  %v84_v20 = vpack.c.bf16 %v76_v10, %v68_v9  ;;  %v87_v23 = vpack.c.bf16 %v79_v19, %v71_v18 }
  0x3e   :  { %369 = vmatpush.bf16.msrb.mxu2 %v270_v26  ;;  %v85_v21 = vpack.c.bf16 %v77_v14, %v69_v11 }
  0x3f   :  { %383 = vmatpush.bf16.msrb.mxu3 %v278_v30 }
  0x40   :  { %342 = vmatpush.bf16.msrb.mxu0 %v253_v36 }
  0x41   :  { %356 = vmatpush.bf16.msrb.mxu1 %v261_v37 }
  0x42   :  { %370 = vmatpush.bf16.msrb.mxu2 %v269_v38 }
  0x43   :  { %384 = vmatpush.bf16.msrb.mxu3 %v277_v42 }
  0x44   :  { %343 = vmatpush.bf16.msrb.mxu0 %v252_v48 }
  0x45   :  { %357 = vmatpush.bf16.msrb.mxu1 %v260_v49 }
  0x46   :  { %371 = vmatpush.bf16.msrb.mxu2 %v268_v50 }
  0x47   :  { %385 = vmatpush.bf16.msrb.mxu3 %v276_v54 }
  0x48   :  { %344 = vmatpush.bf16.msrb.mxu0 %v251_v60 }
  0x49   :  { %358 = vmatpush.bf16.msrb.mxu1 %v259_v61 }
  0x4a   :  { %372 = vmatpush.bf16.msrb.mxu2 %v267_v62 }
  0x4b   :  { %386 = vmatpush.bf16.msrb.mxu3 %v275_v2 }
  0x4c   :  { %345 = vmatpush.bf16.msrb.mxu0 %v250_v8 }
  0x4d   :  { %359 = vmatpush.bf16.msrb.mxu1 %v258_v12 }
  0x4e   :  { %373 = vmatpush.bf16.msrb.mxu2 %v266_v13 }
  0x4f   :  { %387 = vmatpush.bf16.msrb.mxu3 %v274_v17  ;;  %346 = vmatmul.bf16.vlgmr.msrb.gmra.mxu0 %v84_v20 }
  0x50   :  { %360 = vmatmul.bf16.vlgmr.msrb.gmra.mxu1 %v85_v21 }
  0x51   :  { %374 = vmatmul.bf16.vlgmr.msrb.gmra.mxu2 %v86_v22 }
  0x52   :  { %388 = vmatmul.bf16.vlgmr.msrb.gmra.mxu3 %v87_v23 }
  0xac   :  { %v291_v24 = vpop.f32.mrf.mxu0 }
  0xad   :  { %v305_v25 = vpop.f32.mrf.mxu1 }
  0xae   :  { %v306_v30 = vadd.f32 %v305_v25, %v291_v24 }
  0xb4   :  { %v319_v26 = vpop.f32.mrf.mxu2  ;;  %v293_v28 = vpop.f32.mrf.mxu0 }
  0xb5   :  { %v333_v27 = vpop.f32.mrf.mxu3  ;;  %v307_v29 = vpop.f32.mrf.mxu1  ;;  %v320_v35 = vadd.f32 %v319_v26, %v306_v30 }
  0xb6   :  { %v308_v32 = vadd.f32 %v307_v29, %v293_v28 }
  0xb7   :  { %v334_v38 = vadd.f32 %v333_v27, %v320_v35 }
  0xbc   :  { %v321_v31 = vpop.f32.mrf.mxu2 }
  0xbd   :  { %v335_v33 = vpop.f32.mrf.mxu3  ;;  %v322_v37 = vadd.f32 %v321_v31, %v308_v32 }
  0xbf   :  { %v336_v40 = vadd.f32 %v335_v33, %v322_v37 }
  0xcc   :  { %v347_v34 = vpop.f32.mrf.mxu0 }
  0xcd   :  { %v361_v36 = vpop.f32.mrf.mxu1  ;;  %v348_v41 = vadd.f32 %v347_v34, %v334_v38 }
  0xcf   :  { %v362_v45 = vadd.f32 %v361_v36, %v348_v41 }
  0xd4   :  { %v375_v39 = vpop.f32.mrf.mxu2  ;;  %v349_v43 = vpop.f32.mrf.mxu0 }
  0xd5   :  { %v389_v42 = vpop.f32.mrf.mxu3  ;;  %v350_v44 = vadd.f32 %v349_v43, %v336_v40  ;;  %v363_v46 = vpop.f32.mrf.mxu1  ;;  %v376_v47 = vadd.f32 %v375_v39, %v362_v45 }
  0xd7   :  { %v364_v48 = vadd.f32 %v363_v46, %v350_v44  ;;  %v390_v52 = vadd.f32 %v389_v42, %v376_v47 }
  0xdc   :  { %v377_v49 = vpop.f32.mrf.mxu2 }
  0xdd   :  { %v378_v50 = vadd.f32 %v377_v49, %v364_v48  ;;  %v391_v51 = vpop.f32.mrf.mxu3 }
  0xdf   :  { %v392_v53 = vadd.f32 %v391_v51, %v378_v50 }
  0xe1   :  { %v430_v54 = vpack.c.bf16 %v392_v53, %v390_v52 }
  0xe3   :  { %431 = vst [vmem:[#allocation9] sm:$0xff] %v430_v54  }
  0xe4   :  { %419 = dma.vmem_to_hbm [thread:$0]  %s412_s2, 128, %s414_s30, [#allocation5], %s548_s4, %s548_s4, %s549_s5  }
  0xe5   :  { %540 = dma.done.wait [#allocation5], 128  }
  0xe6   :  { %541 = vsyncadd [#allocation5], 4294967168 }
  0xe7   :  { %424 = vsyncpa [#allocation4], 1 }
  0xe8   :  { %425 = vsyncpa [#allocation7], 1 }
  0xe9   :  { %426 = vsyncpa [#allocation5], 1 }

</bundles_post_ra>
